<compile_context>
chip_gen: v6e
topology: v6e:2x2x1
jax: 0.10.0
libtpu: 0.0.40
codegen_flags: <defaults>
</compile_context>

<pallas_src>
import functools

import jax
import jax.numpy as jnp
from jax.experimental import pallas as pl
from jax.experimental.pallas import tpu as pltpu

LANES = 128


def _round_up(x, m):
    return ((x + m - 1) // m) * m


def _cdiv(a, b):
    return -(-a // b)


def _is_v7x():
    # Gate the 2-TensorCore split / larger tiles on actually running on v7x.
    try:
        kind = jax.devices()[0].device_kind.lower().replace(" ", "")
    except Exception:
        return False
    return "v7" in kind or "tpu7" in kind


def _focal_loss_kernel(*refs, gamma, pos_weight, eps, use_mask, tile_rows, valid_rows):
    if use_mask:
        x_ref, t_ref, m_ref, sum_out, cnt_out, sum_acc, cnt_acc = refs
    else:
        x_ref, t_ref, sum_out, cnt_out, sum_acc, cnt_acc = refs
        m_ref = None

    j = pl.program_id(1)  # reduction axis within this split

    @pl.when(j == 0)
    def _():
        sum_acc[...] = jnp.zeros_like(sum_acc)
        cnt_acc[...] = jnp.zeros_like(cnt_acc)

    x = x_ref[...].astype(jnp.float32)
    t = t_ref[...]
    is_pos = t == 1
    is_neg = t == 0

    p = jax.nn.sigmoid(x)
    one_m_p = 1.0 - p
    # Single-log rewrite: q = p at pos positions, (1-p) at neg positions, so
    # -(1-q)^gamma * log(q + eps) reproduces both reference branches with the same
    # eps placement while evaluating only one log/pow chain per element.
    q = jnp.where(is_pos, p, one_m_p)
    base = -((1.0 - q) ** gamma) * jnp.log(q + eps)

    pos_branch = base
    if pos_weight != 1.0:
        pos_branch = pos_branch * pos_weight              # reference order: * pos first
    if use_mask:
        pos_branch = pos_branch * (1.0 + m_ref[...].astype(jnp.float32))  # then * (1+m)

    if valid_rows is not None:
        # Partial last block: rows beyond the array are undefined -> mask by row index.
        block = pl.program_id(0) * pl.num_programs(1) + j
        row0 = block * tile_rows
        rows = jax.lax.broadcasted_iota(jnp.int32, (tile_rows, LANES), 0) + row0
        in_bounds = rows < valid_rows
        is_pos = jnp.logical_and(is_pos, in_bounds)
        is_neg = jnp.logical_and(is_neg, in_bounds)

    elem = jnp.where(is_pos, pos_branch, jnp.where(is_neg, base, 0.0))
    valid = jnp.logical_or(is_pos, is_neg).astype(jnp.int32)

    # Fold the (tile_rows,128) tile into an (8,128) vreg group with pure VPU adds
    # (sublane-aligned reshape, no XLU), then accumulate into the tiny resident scratch.
    groups = tile_rows // 8
    sum_acc[...] += jnp.sum(elem.reshape(groups, 8, LANES), axis=0)
    cnt_acc[...] += jnp.sum(valid.reshape(groups, 8, LANES), axis=0)

    @pl.when(j == pl.num_programs(1) - 1)
    def _():
        sum_out[...] = sum_acc[...]
        cnt_out[...] = cnt_acc[...]


def focal_loss(inputs, targets, masks=None, *, pos=1, alpha=0.3, gamma=2,
               size_average=True, eps=1e-7):
    """Pallas implementation of FocalLoss.forward (alpha is unused, as in the module).

    NOTE: if no target is exactly 0 or 1 the result is NaN, matching the PyTorch module.
    """
    del alpha
    if not size_average:
        # TODO(synk): size_average=False returns a ragged, dynamically-sized
        # concat(loss_pos, loss_neg) vector; no clean static-shape Pallas output.
        raise NotImplementedError("size_average=False not supported")

    x = jnp.asarray(inputs)
    if x.dtype not in (jnp.float32, jnp.bfloat16):
        x = x.astype(jnp.float32)
    x = x.reshape(-1)

    t = jnp.asarray(targets)
    if t.dtype not in (jnp.float32, jnp.bfloat16):
        t = t.astype(jnp.float32)
    t = t.reshape(-1)

    use_mask = masks is not None
    if use_mask:
        m = jnp.asarray(masks)
        if m.dtype not in (jnp.float32, jnp.bfloat16):
            m = m.astype(jnp.float32)
        m = m.reshape(-1)

    n = x.shape[0]
    # Minimal alignment: a multiple of 8*128 elements so the (rows,128) reshape is free
    # and rows are sublane-aligned. The pad pass only triggers for non-1024-multiple n;
    # padded targets get -1 -> excluded by the in-kernel value check.
    n_pad = _round_up(n, 8 * LANES)
    rows_total = n_pad // LANES

    def _prep(a, pad_value):
        if n_pad != n:
            a = jnp.pad(a, (0, n_pad - n), constant_values=pad_value)
        return a.reshape(rows_total, LANES)

    x2 = _prep(x, 0)
    t2 = _prep(t, -1)

    is_v7x = _is_v7x()
    max_tile_rows = 4096 if is_v7x else 2048
    # Adaptive tile: smallest block count that fits max_tile_rows, then shrink the tile
    # so the grid overshoots rows_total by at most a few 8-row groups (no big padding).
    num_blocks = _cdiv(rows_total, max_tile_rows)
    tile_rows = min(max_tile_rows, _round_up(_cdiv(rows_total, num_blocks), 8))
    num_blocks = _cdiv(rows_total, tile_rows)

    # 2-way split across TensorCores only on v7x (2 TCs). Single-TC chips keep
    # nsplit=1 (the split would only add padding / a duplicated init+epilogue).
    nsplit = 2 if (is_v7x and num_blocks >= 2 and num_blocks % 2 == 0) else 1
    blocks_per_split = num_blocks // nsplit

    covered_rows = num_blocks * tile_rows
    valid_rows = rows_total if covered_rows > rows_total else None

    def data_spec():
        return pl.BlockSpec((tile_rows, LANES),
                            lambda s, j: (s * blocks_per_split + j, 0))

    operands = [x2, t2]
    in_specs = [data_spec(), data_spec()]
    if use_mask:
        operands.append(_prep(m, 0))
        in_specs.append(data_spec())

    kernel = functools.partial(
        _focal_loss_kernel,
        gamma=int(gamma) if float(gamma).is_integer() else float(gamma),
        pos_weight=float(pos),
        eps=float(eps),
        use_mask=use_mask,
        tile_rows=tile_rows,
        valid_rows=valid_rows)

    out_sum, out_cnt = pl.pallas_call(
        kernel,
        out_shape=(jax.ShapeDtypeStruct((nsplit * 8, LANES), jnp.float32),
                   jax.ShapeDtypeStruct((nsplit * 8, LANES), jnp.int32)),
        grid_spec=pltpu.PrefetchScalarGridSpec(
            num_scalar_prefetch=0,
            grid=(nsplit, blocks_per_split),
            in_specs=in_specs,
            out_specs=[pl.BlockSpec((8, LANES), lambda s, j: (s, 0)),
                       pl.BlockSpec((8, LANES), lambda s, j: (s, 0))],
            scratch_shapes=[pltpu.VMEM((8, LANES), jnp.float32),   # partial sums
                            pltpu.VMEM((8, LANES), jnp.int32)],    # partial counts
        ),
        compiler_params=pltpu.CompilerParams(
            dimension_semantics=("parallel", "arbitrary"),
            vmem_limit_bytes=32 * 1024 * 1024),
    )(*operands)

    # Final tiny (<=16,128) reductions + the division stay in XLA (negligible).
    total_sum = jnp.sum(out_sum)
    total_cnt = jnp.sum(out_cnt)                # exact int32 count
    return total_sum / total_cnt.astype(jnp.float32)


def _focal_loss_ref(inputs, targets, masks=None, *, pos=1, gamma=2, eps=1e-7):
    """Pure-JAX reference mirroring the PyTorch forward (size_average=True)."""
    x = jnp.asarray(inputs, jnp.float32).reshape(-1)
    t = jnp.asarray(targets, jnp.float32).reshape(-1)
    m = jnp.zeros_like(x) if masks is None else jnp.asarray(masks, jnp.float32).reshape(-1)
    p = jax.nn.sigmoid(x)
    is_pos = t == 1.0
    is_neg = t == 0.0
    lp = -((1.0 - p) ** gamma) * jnp.log(p + eps) * pos * (1.0 + m)
    ln = -(p ** gamma) * jnp.log(1.0 - p + eps)
    elem = jnp.where(is_pos, lp, jnp.where(is_neg, ln, 0.0))
    cnt = jnp.sum(is_pos) + jnp.sum(is_neg)
    return jnp.sum(elem) / cnt.astype(jnp.float32)


if __name__ == "__main__":
    key = jax.random.PRNGKey(0)
    ks = jax.random.split(key, 8)

    # Small dense per-pixel heatmap head: NCHW logits, targets in {0,1}.
    B, C, H, W = 2, 4, 16, 16
    inputs = jax.random.normal(ks[0], (B, C, H, W), dtype=jnp.float32)
    targets = (jax.random.uniform(ks[1], (B, C, H, W)) < 0.25).astype(jnp.float32)
    masks = jax.random.uniform(ks[2], (B, C, H, W), dtype=jnp.float32)

    loss = jax.block_until_ready(focal_loss(inputs, targets))
    ref = _focal_loss_ref(inputs, targets)
    assert jnp.allclose(loss, ref, rtol=1e-4, atol=1e-6), (loss, ref)

    loss_m = jax.block_until_ready(focal_loss(inputs, targets, masks))
    ref_m = _focal_loss_ref(inputs, targets, masks)
    assert jnp.allclose(loss_m, ref_m, rtol=1e-4, atol=1e-6), (loss_m, ref_m)

    # Targets outside {0,1} are dropped from both the sum and the count (no-mask branch).
    u = jax.random.uniform(ks[3], (B, C, H, W))
    targets_mixed = jnp.where(u < 0.2, 1.0, jnp.where(u < 0.9, 0.0, 0.5))
    loss_x = jax.block_until_ready(focal_loss(inputs, targets_mixed))
    ref_x = _focal_loss_ref(inputs, targets_mixed)
    assert jnp.allclose(loss_x, ref_x, rtol=1e-4, atol=1e-6), (loss_x, ref_x)

    # Moderate, non-1024-aligned shape: exercises the minimal tail pad, the multi-block
    # grid, and the partial-last-block in-kernel row masking.
    B2, C2, H2, W2 = 2, 4, 200, 200
    inputs2 = jax.random.normal(ks[4], (B2, C2, H2, W2), dtype=jnp.float32)
    targets2 = (jax.random.uniform(ks[5], (B2, C2, H2, W2)) < 0.1).astype(jnp.float32)
    masks2 = jax.random.uniform(ks[6], (B2, C2, H2, W2), dtype=jnp.float32)

    loss2 = jax.block_until_ready(focal_loss(inputs2, targets2))
    ref2 = _focal_loss_ref(inputs2, targets2)
    assert jnp.allclose(loss2, ref2, rtol=1e-4, atol=1e-6), (loss2, ref2)

    loss2_m = jax.block_until_ready(focal_loss(inputs2, targets2, masks2))
    ref2_m = _focal_loss_ref(inputs2, targets2, masks2)
    assert jnp.allclose(loss2_m, ref2_m, rtol=1e-4, atol=1e-6), (loss2_m, ref2_m)

    print("KERNEL_OK")
</pallas_src>

<mosaic_0001>
module attributes {stable_mosaic.version = 11 : i64} {
  func.func @_focal_loss_kernel(%arg0: i32, %arg1: i32, %arg2: memref<16x128xf32, #tpu.memory_space<vmem>>, %arg3: memref<16x128xf32, #tpu.memory_space<vmem>>, %arg4: memref<8x128xf32, #tpu.memory_space<vmem>>, %arg5: memref<8x128xi32, #tpu.memory_space<vmem>>, %arg6: memref<8x128xf32, #tpu.memory_space<vmem>>, %arg7: memref<8x128xi32, #tpu.memory_space<vmem>>) attributes {dimension_semantics = [#tpu.dimension_semantics<parallel>, #tpu.dimension_semantics<arbitrary>], iteration_bounds = array<i64: 1, 1>, scalar_prefetch = 0 : i64, scratch_operands = 2 : i64, tpu.core_type = #tpu.core_type<tc>, window_params = [{transform_indices = @transform_0, window_bounds = array<i64: 16, 128>}, {transform_indices = @transform_1, window_bounds = array<i64: 16, 128>}, {transform_indices = @transform_2, window_bounds = array<i64: 8, 128>}, {transform_indices = @transform_3, window_bounds = array<i64: 8, 128>}]} {
    %c0_i32 = arith.constant 0 : i32
    %0 = arith.cmpi eq, %arg1, %c0_i32 : i32
    %1 = arith.extui %0 : i1 to i32
    %c0_i32_0 = arith.constant 0 : i32
    %2 = arith.cmpi ne, %1, %c0_i32_0 : i32
    scf.if %2 {
      %cst_23 = arith.constant 0.000000e+00 : f32
      %44 = vector.broadcast %cst_23 : f32 to vector<8x128xf32>
      %c0_24 = arith.constant 0 : index
      %c0_25 = arith.constant 0 : index
      %45 = vector.load %arg6[%c0_24, %c0_25] : memref<8x128xf32, #tpu.memory_space<vmem>>, vector<8x128xf32>
      tpu.vector_store %arg6[%c0_24, %c0_25], %44 {strides = array<i32>} : memref<8x128xf32, #tpu.memory_space<vmem>>, vector<8x128xf32>,
      %c0_i32_26 = arith.constant 0 : i32
      %46 = vector.broadcast %c0_i32_26 : i32 to vector<8x128xi32>
      %c0_27 = arith.constant 0 : index
      %c0_28 = arith.constant 0 : index
      %47 = vector.load %arg7[%c0_27, %c0_28] : memref<8x128xi32, #tpu.memory_space<vmem>>, vector<8x128xi32>
      tpu.vector_store %arg7[%c0_27, %c0_28], %46 {strides = array<i32>} : memref<8x128xi32, #tpu.memory_space<vmem>>, vector<8x128xi32>,
    } else {
    }
    %c0 = arith.constant 0 : index
    %c0_1 = arith.constant 0 : index
    %3 = vector.load %arg2[%c0, %c0_1] : memref<16x128xf32, #tpu.memory_space<vmem>>, vector<16x128xf32>
    %c0_2 = arith.constant 0 : index
    %c0_3 = arith.constant 0 : index
    %4 = vector.load %arg3[%c0_2, %c0_3] : memref<16x128xf32, #tpu.memory_space<vmem>>, vector<16x128xf32>
    %cst = arith.constant 1.000000e+00 : f32
    %5 = vector.broadcast %cst : f32 to vector<16x128xf32>
    %6 = arith.cmpf oeq, %4, %5 : vector<16x128xf32>
    %cst_4 = arith.constant 0.000000e+00 : f32
    %7 = vector.broadcast %cst_4 : f32 to vector<16x128xf32>
    %8 = arith.cmpf oeq, %4, %7 : vector<16x128xf32>
    %9 = arith.negf %3 : vector<16x128xf32>
    %10 = math.exp %9 : vector<16x128xf32>
    %cst_5 = arith.constant 1.000000e+00 : f32
    %11 = vector.broadcast %cst_5 : f32 to vector<16x128xf32>
    %12 = arith.addf %11, %10 : vector<16x128xf32>
    %13 = arith.divf %11, %12 : vector<16x128xf32>
    %cst_6 = arith.constant 1.000000e+00 : f32
    %14 = vector.broadcast %cst_6 : f32 to vector<16x128xf32>
    %15 = arith.subf %14, %13 : vector<16x128xf32>
    %16 = arith.select %6, %13, %15 : vector<16x128xi1>, vector<16x128xf32>
    %cst_7 = arith.constant 1.000000e+00 : f32
    %17 = vector.broadcast %cst_7 : f32 to vector<16x128xf32>
    %18 = arith.subf %17, %16 : vector<16x128xf32>
    %19 = arith.mulf %18, %18 : vector<16x128xf32>
    %cst_8 = arith.constant 0.000000e+00 : f32
    %20 = vector.broadcast %cst_8 : f32 to vector<16x128xf32>
    %21 = arith.subf %20, %19 : vector<16x128xf32>
    %cst_9 = arith.constant 1.000000e-07 : f32
    %22 = vector.broadcast %cst_9 : f32 to vector<16x128xf32>
    %23 = arith.addf %16, %22 : vector<16x128xf32>
    %24 = math.log %23 : vector<16x128xf32>
    %25 = arith.mulf %21, %24 : vector<16x128xf32>
    %cst_10 = arith.constant 0.000000e+00 : f32
    %26 = vector.broadcast %cst_10 : f32 to vector<16x128xf32>
    %27 = arith.select %8, %25, %26 : vector<16x128xi1>, vector<16x128xf32>
    %28 = arith.select %6, %25, %27 : vector<16x128xi1>, vector<16x128xf32>
    %29 = arith.ori %6, %8 : vector<16x128xi1>
    %30 = arith.extui %29 : vector<16x128xi1> to vector<16x128xi32>
    %c0_11 = arith.constant 0 : index
    %c0_12 = arith.constant 0 : index
    %31 = vector.load %arg6[%c0_11, %c0_12] : memref<8x128xf32, #tpu.memory_space<vmem>>, vector<8x128xf32>
    %32 = vector.shape_cast %28 : vector<16x128xf32> to vector<2x8x128xf32>
    %cst_13 = arith.constant dense<0.000000e+00> : vector<8x128xf32>
    %33 = vector.multi_reduction <add>, %32, %cst_13 [0] : vector<2x8x128xf32> to vector<8x128xf32>
    %34 = arith.addf %31, %33 : vector<8x128xf32>
    %c0_14 = arith.constant 0 : index
    %c0_15 = arith.constant 0 : index
    %35 = vector.load %arg6[%c0_14, %c0_15] : memref<8x128xf32, #tpu.memory_space<vmem>>, vector<8x128xf32>
    tpu.vector_store %arg6[%c0_14, %c0_15], %34 {strides = array<i32>} : memref<8x128xf32, #tpu.memory_space<vmem>>, vector<8x128xf32>,
    %c0_16 = arith.constant 0 : index
    %c0_17 = arith.constant 0 : index
    %36 = vector.load %arg7[%c0_16, %c0_17] : memref<8x128xi32, #tpu.memory_space<vmem>>, vector<8x128xi32>
    %37 = vector.shape_cast %30 : vector<16x128xi32> to vector<2x8x128xi32>
    %cst_18 = arith.constant dense<0> : vector<8x128xi32>
    %38 = vector.multi_reduction <add>, %37, %cst_18 [0] : vector<2x8x128xi32> to vector<8x128xi32>
    %39 = arith.addi %36, %38 : vector<8x128xi32>
    %c0_19 = arith.constant 0 : index
    %c0_20 = arith.constant 0 : index
    %40 = vector.load %arg7[%c0_19, %c0_20] : memref<8x128xi32, #tpu.memory_space<vmem>>, vector<8x128xi32>
    tpu.vector_store %arg7[%c0_19, %c0_20], %39 {strides = array<i32>} : memref<8x128xi32, #tpu.memory_space<vmem>>, vector<8x128xi32>,
    %c0_i32_21 = arith.constant 0 : i32
    %41 = arith.cmpi eq, %arg1, %c0_i32_21 : i32
    %42 = arith.extui %41 : i1 to i32
    %c0_i32_22 = arith.constant 0 : i32
    %43 = arith.cmpi ne, %42, %c0_i32_22 : i32
    scf.if %43 {
      %c0_23 = arith.constant 0 : index
      %c0_24 = arith.constant 0 : index
      %44 = vector.load %arg6[%c0_23, %c0_24] : memref<8x128xf32, #tpu.memory_space<vmem>>, vector<8x128xf32>
      %c0_25 = arith.constant 0 : index
      %c0_26 = arith.constant 0 : index
      %45 = vector.load %arg4[%c0_25, %c0_26] : memref<8x128xf32, #tpu.memory_space<vmem>>, vector<8x128xf32>
      tpu.vector_store %arg4[%c0_25, %c0_26], %44 {strides = array<i32>} : memref<8x128xf32, #tpu.memory_space<vmem>>, vector<8x128xf32>,
      %c0_27 = arith.constant 0 : index
      %c0_28 = arith.constant 0 : index
      %46 = vector.load %arg7[%c0_27, %c0_28] : memref<8x128xi32, #tpu.memory_space<vmem>>, vector<8x128xi32>
      %c0_29 = arith.constant 0 : index
      %c0_30 = arith.constant 0 : index
      %47 = vector.load %arg5[%c0_29, %c0_30] : memref<8x128xi32, #tpu.memory_space<vmem>>, vector<8x128xi32>
      tpu.vector_store %arg5[%c0_29, %c0_30], %46 {strides = array<i32>} : memref<8x128xi32, #tpu.memory_space<vmem>>, vector<8x128xi32>,
    } else {
    }
    return
  }
  func.func @transform_0(%arg0: i32, %arg1: i32) -> (i32, i32) {
    %c1_i32 = arith.constant 1 : i32
    %0 = arith.muli %arg0, %c1_i32 : i32
    %1 = arith.addi %0, %arg1 : i32
    %c0_i32 = arith.constant 0 : i32
    %c0_i32_0 = arith.constant 0 : i32
    return %1, %c0_i32 : i32, i32
  }
  func.func @transform_1(%arg0: i32, %arg1: i32) -> (i32, i32) {
    %c1_i32 = arith.constant 1 : i32
    %0 = arith.muli %arg0, %c1_i32 : i32
    %1 = arith.addi %0, %arg1 : i32
    %c0_i32 = arith.constant 0 : i32
    %c0_i32_0 = arith.constant 0 : i32
    return %1, %c0_i32 : i32, i32
  }
  func.func @transform_2(%arg0: i32, %arg1: i32) -> (i32, i32) {
    %c0_i32 = arith.constant 0 : i32
    %c0_i32_0 = arith.constant 0 : i32
    return %arg0, %c0_i32 : i32, i32
  }
  func.func @transform_3(%arg0: i32, %arg1: i32) -> (i32, i32) {
    %c0_i32 = arith.constant 0 : i32
    %c0_i32_0 = arith.constant 0 : i32
    return %arg0, %c0_i32 : i32, i32
  }
}

</mosaic_0001>

<bundles_post_ra>
// kernel: tpu_custom_call.1
= control target key start
LH: loop header
LB: loop body
LE: loop exit
PB: predicated region body
PF: predicated region fallthrough
CT: control target
= control target key end

     0   :  { %9 = vsyncpa [#allocation5], 0  ;;  %s310_s0 = inlined_call_operand.hbm [shape: f32[16,128], index: 0, kind: input, shape index: {}]   ;;  %s311_s1 = inlined_call_operand.hbm [shape: f32[16,128], index: 1, kind: input, shape index: {}]   ;;  %s312_s2 = inlined_call_operand.hbm [shape: f32[8,128], index: 2, kind: output, shape index: {0}]   ;;  %s313_s3 = inlined_call_operand.hbm [shape: s32[8,128], index: 3, kind: output, shape index: {1}]  }
   0x1   :  { %10 = vsyncpa [#allocation8], 0 }
   0x2   :  { %11 = vsyncpa [#allocation6], 0 }
   0x3   :  { %12 = vsyncpa [#allocation11], 0  ;;  %s261_s12 = smov [#allocation4]  }
   0x4   :  { %s22_s13 = sshll.u32 %s261_s12, 4  ;;  %s23_s13 = int_to_ptr.vmem [resolvable:$true] %s22_s13 }
   0x5   :  { %s181_s14 = scalar_lea.vmem %s23_s13, 256  ;;  %p186_p1 = scmp.lt.s32.totalorder %s23_s13, %s23_s13 }
   0x6   :  { %p182_p0 = scmp.ne.s32.totalorder %s23_s13, %s181_s14  ;;  %p187_p2 = scmp.lt.s32.totalorder %s181_s14, %s181_s14 }
   0x8   :  { %p188_p3 = por %p187_p2, %p186_p1 }
   0xa   :  { %p189_p4 = pnand %p188_p3, %p182_p0 }
   0xc   :  { %192 = shalt.err (!%p189_p4)
}
   0xd   :  { %s262_s15 = smov 128   ;;  %s263_s16 = smov 8  }
   0xe   :  { %28 = dma.hbm_to_vmem [thread:$0]  %s310_s0, 256, %s23_s13, [#allocation5], %s262_s15, %s262_s15, %s263_s16  }
   0xf   :  { %s264_s19 = smov [#allocation7]  }
  0x10   :  { %s38_s20 = sshll.u32 %s264_s19, 4  ;;  %s39_s20 = int_to_ptr.vmem [resolvable:$true] %s38_s20 }
  0x11   :  { %s201_s21 = scalar_lea.vmem %s39_s20, 256  ;;  %p206_p6 = scmp.lt.s32.totalorder %s39_s20, %s39_s20 }
  0x12   :  { %p202_p5 = scmp.ne.s32.totalorder %s39_s20, %s201_s21  ;;  %p207_p7 = scmp.lt.s32.totalorder %s201_s21, %s201_s21 }
  0x14   :  { %p208_p8 = por %p207_p7, %p206_p6 }
  0x16   :  { %p209_p9 = pnand %p208_p8, %p202_p5 }
  0x18   :  { %212 = shalt.err (!%p209_p9)
}
  0x19   :  { %44 = dma.hbm_to_vmem [thread:$0]  %s311_s1, 256, %s39_s20, [#allocation8], %s262_s15, %s262_s15, %s263_s16  }
  0x1a   :  { %253 = dma.done.wait [#allocation5], 256  }
  0x1b   :  { %254 = vsyncadd [#allocation5], 4294967040 }
  0x1c   :  { %255 = dma.done.wait [#allocation8], 256  }
  0x1d   :  { %256 = vsyncadd [#allocation8], 4294967040  ;;  %v61_v0 = vld [vmem:[#allocation4] sm:$0xff]  ;;  %v62_v1 = vld [vmem:[#allocation4 + $0x8] sm:$0xff]  ;;  %s265_s0 = smov [#allocation10]   ;;  %v266_v6 = vmov 0  }
  0x1e   :  { %v63_v2 = vld [vmem:[#allocation7] sm:$0xff]  ;;  %v64_v3 = vld [vmem:[#allocation7 + $0x8] sm:$0xff]  ;;  %v152_v4 = vmul.f32 -1.442695, %v61_v0  ;;  %v153_v5 = vmul.f32 -1.442695, %v62_v1 }
  0x1f   :  { %vm65_vm0 = vcmp.eq.f32.partialorder %v63_v2, 1.0  ;;  %vm67_vm1 = vcmp.eq.f32.partialorder %v63_v2, 0.0  ;;  %vm66_vm2 = vcmp.eq.f32.partialorder %v64_v3, 1.0  ;;  %vm68_vm3 = vcmp.eq.f32.partialorder %v64_v3, 0.0  ;;  %s138_s24 = sshll.u32 %s265_s0, 4  ;;  %s139_s24 = int_to_ptr.vmem [resolvable:$true] %s138_s24 }
  0x20   :  { %vm103_vm4 = vmor %vm65_vm0, %vm67_vm1  ;;  %161 = vpow2.f32 %v152_v4  ;;  %s213_s1 = scalar_lea.vmem %s139_s24, 128  ;;  %p218_p11 = scmp.lt.s32.totalorder %s139_s24, %s139_s24 }
  0x21   :  { %vm104_vm5 = vmor %vm66_vm2, %vm68_vm3  ;;  %v105_v7 = vsel %vm103_vm4, 1, %v266_v6  ;;  %163 = vpow2.f32 %v153_v5  ;;  %p214_p10 = scmp.ne.s32.totalorder %s139_s24, %s213_s1  ;;  %p219_p12 = scmp.lt.s32.totalorder %s213_s1, %s213_s1 }
  0x22   :  { %v106_v8 = vsel %vm104_vm5, 1, %v266_v6 }
  0x23   :  { %v112_v9 = vadd.s32 %v106_v8, %v105_v7  ;;  %p220_p13 = por %p219_p12, %p218_p11 }
  0x25   :  { %121 = vst [vmem:[#allocation10] sm:$0xff] %v112_v9  ;;  %p221_p0 = pnand %p220_p13, %p214_p10 }
  0x27   :  { %224 = shalt.err (!%p221_p0)
}
  0x28   :  { %141 = dma.vmem_to_hbm [thread:$0]  %s139_s24, 128, %s313_s3, [#allocation11]  }
  0x29   :  { %s267_s3 = smov [#allocation9]  }
  0x2a   :  { %s128_s27 = sshll.u32 %s267_s3, 4  ;;  %s129_s27 = int_to_ptr.vmem [resolvable:$true] %s128_s27 }
  0x2b   :  { %s233_s28 = scalar_lea.vmem %s129_s27, 128  ;;  %p238_p2 = scmp.lt.s32.totalorder %s129_s27, %s129_s27 }
  0x2c   :  { %p234_p1 = scmp.ne.s32.totalorder %s129_s27, %s233_s28  ;;  %p239_p3 = scmp.lt.s32.totalorder %s233_s28, %s233_s28 }
  0x2d   :  { %v162_v10 = vpop.eup %161 }
  0x2e   :  { %v164_v11 = vpop.eup %163  ;;  %v75_v12 = vadd.f32 1.0, %v162_v10  ;;  %p240_p4 = por %p239_p3, %p238_p2 }
  0x2f   :  { %v76_v13 = vadd.f32 1.0, %v164_v11 }
  0x30   :  { %165 = vrcp.f32 %v75_v12  ;;  %p241_p5 = pnand %p240_p4, %p234_p1 }
  0x31   :  { %167 = vrcp.f32 %v76_v13 }
  0x3d   :  { %v166_v14 = vpop.eup %165 }
  0x3e   :  { %v168_v15 = vpop.eup %167  ;;  %v81_v16 = vsub.f32 1.0, %v166_v14 }
  0x3f   :  { %v82_v17 = vsub.f32 1.0, %v168_v15 }
  0x40   :  { %v83_v18 = vsel %vm65_vm0, %v166_v14, %v81_v16 }
  0x41   :  { %v84_v19 = vsel %vm66_vm2, %v168_v15, %v82_v17  ;;  %v91_v20 = vadd.f32 1e-07, %v83_v18  ;;  %v85_v22 = vsub.f32 1.0, %v83_v18 }
  0x42   :  { %v92_v21 = vadd.f32 1e-07, %v84_v19  ;;  %v86_v23 = vsub.f32 1.0, %v84_v19 }
  0x43   :  { %169 = vlog2.f32 %v91_v20  ;;  %v87_v24 = vmul.f32 %v85_v22, %v85_v22 }
  0x44   :  { %171 = vlog2.f32 %v92_v21  ;;  %v88_v25 = vmul.f32 %v86_v23, %v86_v23 }
  0x45   :  { %v89_v26 = vsub.f32 0.0, %v87_v24 }
  0x46   :  { %v90_v28 = vsub.f32 0.0, %v88_v25 }
  0x50   :  { %v170_v27 = vpop.eup %169 }
  0x51   :  { %v172_v29 = vpop.eup %171  ;;  %v94_v30 = vmul.f32 0.6931472, %v170_v27 }
  0x52   :  { %v96_v31 = vmul.f32 0.6931472, %v172_v29 }
  0x53   :  { %v97_v32 = vmul.f32 %v94_v30, %v89_v26 }
  0x54   :  { %v98_v33 = vmul.f32 %v96_v31, %v90_v28 }
  0x55   :  { %v99_v34 = vsel %vm67_vm1, %v97_v32, 0.0 }
  0x56   :  { %v100_v35 = vsel %vm68_vm3, %v98_v33, 0.0  ;;  %v101_v36 = vsel %vm65_vm0, %v97_v32, %v99_v34 }
  0x57   :  { %v102_v37 = vsel %vm66_vm2, %v98_v33, %v100_v35 }
  0x58   :  { %v108_v38 = vadd.f32 %v102_v37, %v101_v36 }
  0x5a   :  { %119 = vst [vmem:[#allocation9] sm:$0xff] %v108_v38 }
  0x5b   :  { %244 = shalt.err (!%p241_p5)
}
  0x5c   :  { %131 = dma.vmem_to_hbm [thread:$0]  %s129_s27, 128, %s312_s2, [#allocation6]  }
  0x5d   :  { %257 = dma.done.wait [#allocation6], 128  }
  0x5e   :  { %258 = vsyncadd [#allocation6], 4294967168 }
  0x5f   :  { %259 = dma.done.wait [#allocation11], 128  }
  0x60   :  { %260 = vsyncadd [#allocation11], 4294967168 }
  0x61   :  { %148 = vsyncpa [#allocation5], 1 }
  0x62   :  { %149 = vsyncpa [#allocation8], 1 }
  0x63   :  { %150 = vsyncpa [#allocation6], 1 }
  0x64   :  { %151 = vsyncpa [#allocation11], 1 }

</bundles_post_ra>
